<compile_context>
chip_gen: v7x
topology: tpu7x:2x2x1
jax: 0.10.0
libtpu: 0.0.40
codegen_flags: <defaults>
</compile_context>

<pallas_src>
import functools

import jax
import jax.numpy as jnp
from jax.experimental import pallas as pl
from jax.experimental.pallas import tpu as pltpu

LANE = 128
SUBLANE = 8


def _round_up(n, m):
    return ((n + m - 1) // m) * m


def _const_spec(shape):
    """BlockSpec for a grid-invariant operand (same block every grid step).

    Single-buffered via pipeline_mode=pl.Buffered(1): fetched once, stays
    VMEM-resident, no double-buffer waste. Falls back to a plain BlockSpec if
    this jax version does not expose pipeline_mode / Buffered.
    """
    index_map = lambda i: (0,) * len(shape)
    try:
        return pl.BlockSpec(shape, index_map, pipeline_mode=pl.Buffered(1))
    except (AttributeError, TypeError):
        return pl.BlockSpec(shape, index_map)


def attention_kernel(x_ref, w1_ref, b1_ref, w2_ref, b2_ref, o_ref, *, valid_d):
    """One batch tile: Linear -> ReLU -> Linear -> row softmax."""
    dp = o_ref.shape[-1]

    # Linear 1 + ReLU: MXU dot in compute dtype (bf16 by default), f32 accumulate.
    h = jnp.dot(x_ref[...], w1_ref[...], preferred_element_type=jnp.float32)
    h = jnp.maximum(h + b1_ref[...], 0.0)

    # Linear 2.
    s = jnp.dot(h.astype(w2_ref.dtype), w2_ref[...],
                preferred_element_type=jnp.float32) + b2_ref[...]

    # Softmax over the feature (last) axis == PyTorch Softmax(dim=1) on 2-D x.
    if valid_d != dp:
        # Mask padded lanes; (1, Dp) iota broadcasts against (TB, Dp).
        # exp(-inf - m) == 0, so no second where is needed.
        lane = jax.lax.broadcasted_iota(jnp.int32, (1, dp), 1)
        s = jnp.where(lane < valid_d, s, -jnp.inf)
    m = jnp.max(s, axis=1, keepdims=True)
    e = jnp.exp(s - m)
    denom = jnp.sum(e, axis=1, keepdims=True)
    # Exact EUP reciprocal: approx=True drifted row sums by >1e-3 (failed check).
    o_ref[...] = (e * pl.reciprocal(denom, approx=False)).astype(o_ref.dtype)


def attention_mechanism(x, w1, b1, w2, b2, *, block_b=512,
                        compute_dtype=jnp.bfloat16, out_dtype=jnp.bfloat16):
    """softmax(relu(x @ w1 + b1) @ w2 + b2, axis=1).

    x: (B, D); w1/w2: (D, D) stored (in, out) so y = x @ w + b matches
    nn.Linear; b1/b2: (1, D).

    compute_dtype/out_dtype default to bf16 (MXU peak + half the HBM traffic
    for x/out); pass jnp.float32 for full f32 fidelity.
    block_b: per-generation tuning knob (~256 on v5e, up to 1024 on v6e).
    """
    B, D = x.shape
    assert w1.shape == (D, D) and w2.shape == (D, D)

    # Lane-dense feature dim: pad to a multiple of 128 and no further.
    Dp = _round_up(max(D, LANE), LANE)
    pad_d = Dp - D

    # Balanced batch tiles (multiples of 8 sublanes); no wrapper-side batch
    # padding -- the grid uses cdiv and Pallas masks the partial last tile.
    n_tiles = pl.cdiv(B, block_b)
    if B >= 2 * SUBLANE:
        n_tiles = max(n_tiles, 2)   # >=2 tiles keeps both v7x TensorCores busy
    TB = max(_round_up(pl.cdiv(B, n_tiles), SUBLANE), SUBLANE)
    num_tiles = pl.cdiv(B, TB)

    f32 = jnp.float32
    xc = x.astype(compute_dtype)
    if pad_d:
        xc = jnp.pad(xc, ((0, 0), (0, pad_d)))
    # Zero padding of weight rows/cols keeps padded lanes from contaminating
    # valid outputs; weights are tiny relative to the batch, so this is cheap.
    w1p = jnp.pad(w1.astype(f32), ((0, pad_d), (0, pad_d))).astype(compute_dtype)
    w2p = jnp.pad(w2.astype(f32), ((0, pad_d), (0, pad_d))).astype(compute_dtype)
    b1p = jnp.pad(b1.astype(f32), ((0, 0), (0, pad_d)))
    b2p = jnp.pad(b2.astype(f32), ((0, 0), (0, pad_d)))

    cdt = jnp.dtype(compute_dtype).itemsize
    odt = jnp.dtype(out_dtype).itemsize

    # Scoped-VMEM budget: pipelined buffers + in-kernel f32 temporaries,
    # +30% headroom; floored at 16 MiB (v5e default) and capped under v7x's
    # 64 MiB physical VMEM.
    vmem_need = (
        2 * TB * Dp * cdt          # x tile, double buffered
        + 2 * TB * Dp * odt        # out tile, double buffered
        + 2 * Dp * Dp * cdt        # w1 + w2, single buffered (resident)
        + 2 * Dp * 4               # biases
        + 4 * TB * Dp * 4          # h / s / e / cast temporaries (f32)
    )
    vmem_limit = min(max(int(1.3 * vmem_need) + (1 << 20), 16 << 20), 60 << 20)

    kernel = functools.partial(attention_kernel, valid_d=D)

    out = pl.pallas_call(
        kernel,
        out_shape=jax.ShapeDtypeStruct((B, Dp), out_dtype),
        grid=(num_tiles,),
        in_specs=[
            pl.BlockSpec((TB, Dp), lambda i: (i, 0)),   # x: tiled over batch
            _const_spec((Dp, Dp)),                      # w1: VMEM-resident
            _const_spec((1, Dp)),                       # b1
            _const_spec((Dp, Dp)),                      # w2: VMEM-resident
            _const_spec((1, Dp)),                       # b2
        ],
        out_specs=pl.BlockSpec((TB, Dp), lambda i: (i, 0)),
        compiler_params=pltpu.CompilerParams(
            dimension_semantics=("parallel",),
            vmem_limit_bytes=vmem_limit,
        ),
        cost_estimate=pl.CostEstimate(
            flops=2 * (2 * num_tiles * TB * Dp * Dp),       # two matmuls
            transcendentals=num_tiles * TB * Dp,            # exp
            bytes_accessed=B * Dp * (cdt + odt)             # x in, out
                           + 2 * Dp * Dp * cdt              # weights
                           + 2 * Dp * 4,                    # biases
        ),
        # TODO(synk): for large D on v7x (64 MiB VMEM), add an "arbitrary" grid
        # axis tiling the weights' K/N dims with an f32 accumulator scratch and
        # an h scratch instead of keeping both full weight matrices resident.
    )(xc, w1p, b1p, w2p, b2p)

    return out if pad_d == 0 else out[:, :D]


def init_params(key, embed_dim):
    """Deterministic parameter init (PyTorch-Linear-style uniform bounds)."""
    k1, k2, k3, k4 = jax.random.split(key, 4)
    bound = 1.0 / (embed_dim ** 0.5)
    w1 = jax.random.uniform(k1, (embed_dim, embed_dim), jnp.float32, -bound, bound)
    b1 = jax.random.uniform(k2, (1, embed_dim), jnp.float32, -bound, bound)
    w2 = jax.random.uniform(k3, (embed_dim, embed_dim), jnp.float32, -bound, bound)
    b2 = jax.random.uniform(k4, (1, embed_dim), jnp.float32, -bound, bound)
    return w1, b1, w2, b2


if __name__ == "__main__":
    key = jax.random.PRNGKey(0)
    kx, kp = jax.random.split(key)

    batch, embed_dim = 8, 32
    x = jax.random.normal(kx, (batch, embed_dim), jnp.float32)
    w1, b1, w2, b2 = init_params(kp, embed_dim)

    out = attention_mechanism(x, w1, b1, w2, b2)
    out = jax.block_until_ready(out)
    out_f32 = out.astype(jnp.float32)

    # Reference check in plain JAX (same math as the PyTorch module), f32.
    h_ref = jnp.maximum(x @ w1 + b1, 0.0)
    s_ref = h_ref @ w2 + b2
    ref = jax.nn.softmax(s_ref, axis=1)

    assert out.shape == (batch, embed_dim)
    # Tolerance accounts for bf16 MXU inputs and bf16 output.
    max_err = float(jnp.max(jnp.abs(out_f32 - ref)))
    assert jnp.allclose(out_f32, ref, atol=2e-2, rtol=2e-2), max_err
    # Exact f32 normalization in-kernel; only bf16 output quantization remains.
    assert jnp.allclose(jnp.sum(out_f32, axis=1), 1.0, atol=1e-2)

    print("KERNEL_OK")
</pallas_src>

<mosaic_0001>
module attributes {stable_mosaic.version = 11 : i64} {
  func.func @attention_kernel(%arg0: i32, %arg1: memref<8x128xbf16, #tpu.memory_space<vmem>>, %arg2: memref<128x128xbf16, #tpu.memory_space<vmem>>, %arg3: memref<1x128xf32, #tpu.memory_space<vmem>>, %arg4: memref<128x128xbf16, #tpu.memory_space<vmem>>, %arg5: memref<1x128xf32, #tpu.memory_space<vmem>>, %arg6: memref<8x128xbf16, #tpu.memory_space<vmem>>) attributes {dimension_semantics = [#tpu.dimension_semantics<parallel>], iteration_bounds = array<i64: 1>, scalar_prefetch = 0 : i64, scratch_operands = 0 : i64, tpu.core_type = #tpu.core_type<tc>, window_params = [{transform_indices = @transform_0, window_bounds = array<i64: 8, 128>}, {pipeline_mode = #tpu.pipeline_mode<synchronous>, transform_indices = @transform_1, window_bounds = array<i64: 128, 128>}, {pipeline_mode = #tpu.pipeline_mode<synchronous>, transform_indices = @transform_2, window_bounds = array<i64: 1, 128>}, {pipeline_mode = #tpu.pipeline_mode<synchronous>, transform_indices = @transform_3, window_bounds = array<i64: 128, 128>}, {pipeline_mode = #tpu.pipeline_mode<synchronous>, transform_indices = @transform_4, window_bounds = array<i64: 1, 128>}, {transform_indices = @transform_5, window_bounds = array<i64: 8, 128>}]} {
    %c0 = arith.constant 0 : index
    %c0_0 = arith.constant 0 : index
    %0 = vector.load %arg1[%c0, %c0_0] : memref<8x128xbf16, #tpu.memory_space<vmem>>, vector<8x128xbf16>
    %c0_1 = arith.constant 0 : index
    %c0_2 = arith.constant 0 : index
    %1 = vector.load %arg2[%c0_1, %c0_2] : memref<128x128xbf16, #tpu.memory_space<vmem>>, vector<128x128xbf16>
    %cst = arith.constant dense<0.000000e+00> : vector<8x128xf32>
    %2 = tpu.matmul %0, %1, %cst {dimension_numbers = #tpu.dot_dimension_numbers<[1], [0], [0], [1], [0, 0, 1, 1], [], []>} : vector<8x128xbf16>, vector<128x128xbf16>, vector<8x128xf32> -> vector<8x128xf32>
    %c0_3 = arith.constant 0 : index
    %c0_4 = arith.constant 0 : index
    %3 = vector.load %arg3[%c0_3, %c0_4] : memref<1x128xf32, #tpu.memory_space<vmem>>, vector<1x128xf32>
    %4 = vector.broadcast %3 : vector<1x128xf32> to vector<8x128xf32>
    %5 = arith.addf %2, %4 : vector<8x128xf32>
    %cst_5 = arith.constant 0.000000e+00 : f32
    %6 = vector.broadcast %cst_5 : f32 to vector<8x128xf32>
    %7 = arith.maximumf %5, %6 : vector<8x128xf32>
    %8 = arith.truncf %7 : vector<8x128xf32> to vector<8x128xbf16>
    %c0_6 = arith.constant 0 : index
    %c0_7 = arith.constant 0 : index
    %9 = vector.load %arg4[%c0_6, %c0_7] : memref<128x128xbf16, #tpu.memory_space<vmem>>, vector<128x128xbf16>
    %cst_8 = arith.constant dense<0.000000e+00> : vector<8x128xf32>
    %10 = tpu.matmul %8, %9, %cst_8 {dimension_numbers = #tpu.dot_dimension_numbers<[1], [0], [0], [1], [0, 0, 1, 1], [], []>} : vector<8x128xbf16>, vector<128x128xbf16>, vector<8x128xf32> -> vector<8x128xf32>
    %c0_9 = arith.constant 0 : index
    %c0_10 = arith.constant 0 : index
    %11 = vector.load %arg5[%c0_9, %c0_10] : memref<1x128xf32, #tpu.memory_space<vmem>>, vector<1x128xf32>
    %12 = vector.broadcast %11 : vector<1x128xf32> to vector<8x128xf32>
    %13 = arith.addf %10, %12 : vector<8x128xf32>
    %14 = tpu.iota {dimensions = array<i32: 1>} : vector<1x128xi32>
    %c32_i32 = arith.constant 32 : i32
    %15 = vector.broadcast %c32_i32 : i32 to vector<1x128xi32>
    %16 = arith.cmpi slt, %14, %15 : vector<1x128xi32>
    %cst_11 = arith.constant 0xFF800000 : f32
    %17 = vector.shape_cast %16 : vector<1x128xi1> to vector<1x128xi1>
    %18 = vector.broadcast %17 : vector<1x128xi1> to vector<8x128xi1>
    %19 = vector.broadcast %cst_11 : f32 to vector<8x128xf32>
    %20 = arith.select %18, %13, %19 : vector<8x128xi1>, vector<8x128xf32>
    %cst_12 = arith.constant dense<0xFF800000> : vector<8xf32>
    %21 = vector.multi_reduction <maximumf>, %20, %cst_12 [1] : vector<8x128xf32> to vector<8xf32>
    %22 = vector.shape_cast %21 : vector<8xf32> to vector<8x1xf32>
    %23 = vector.broadcast %22 : vector<8x1xf32> to vector<8x128xf32>
    %24 = arith.subf %20, %23 : vector<8x128xf32>
    %25 = math.exp %24 : vector<8x128xf32>
    %cst_13 = arith.constant dense<0.000000e+00> : vector<8xf32>
    %26 = vector.multi_reduction <add>, %25, %cst_13 [1] : vector<8x128xf32> to vector<8xf32>
    %27 = vector.shape_cast %26 : vector<8xf32> to vector<8x1xf32>
    %28 = tpu.reciprocal %27 : vector<8x1xf32> -> vector<8x1xf32>
    %29 = vector.broadcast %28 : vector<8x1xf32> to vector<8x128xf32>
    %30 = arith.mulf %25, %29 : vector<8x128xf32>
    %31 = arith.truncf %30 : vector<8x128xf32> to vector<8x128xbf16>
    %c0_14 = arith.constant 0 : index
    %c0_15 = arith.constant 0 : index
    %32 = vector.load %arg6[%c0_14, %c0_15] : memref<8x128xbf16, #tpu.memory_space<vmem>>, vector<8x128xbf16>
    tpu.vector_store %arg6[%c0_14, %c0_15], %31 {strides = array<i32>} : memref<8x128xbf16, #tpu.memory_space<vmem>>, vector<8x128xbf16>,
    return
  }
  func.func @transform_0(%arg0: i32) -> (i32, i32) {
    %c0_i32 = arith.constant 0 : i32
    %c0_i32_0 = arith.constant 0 : i32
    return %arg0, %c0_i32 : i32, i32
  }
  func.func @transform_1(%arg0: i32) -> (i32, i32) {
    %c0_i32 = arith.constant 0 : i32
    %c0_i32_0 = arith.constant 0 : i32
    %c0_i32_1 = arith.constant 0 : i32
    return %c0_i32, %c0_i32_0 : i32, i32
  }
  func.func @transform_2(%arg0: i32) -> (i32, i32) {
    %c0_i32 = arith.constant 0 : i32
    %c0_i32_0 = arith.constant 0 : i32
    %c0_i32_1 = arith.constant 0 : i32
    return %c0_i32, %c0_i32_0 : i32, i32
  }
  func.func @transform_3(%arg0: i32) -> (i32, i32) {
    %c0_i32 = arith.constant 0 : i32
    %c0_i32_0 = arith.constant 0 : i32
    %c0_i32_1 = arith.constant 0 : i32
    return %c0_i32, %c0_i32_0 : i32, i32
  }
  func.func @transform_4(%arg0: i32) -> (i32, i32) {
    %c0_i32 = arith.constant 0 : i32
    %c0_i32_0 = arith.constant 0 : i32
    %c0_i32_1 = arith.constant 0 : i32
    return %c0_i32, %c0_i32_0 : i32, i32
  }
  func.func @transform_5(%arg0: i32) -> (i32, i32) {
    %c0_i32 = arith.constant 0 : i32
    %c0_i32_0 = arith.constant 0 : i32
    return %arg0, %c0_i32 : i32, i32
  }
}

</mosaic_0001>

<bundles_post_ra>
// kernel: tpu_custom_call.1
= control target key start
LH: loop header
LB: loop body
LE: loop exit
PB: predicated region body
PF: predicated region fallthrough
CT: control target
= control target key end

     0   :  { %10 = vsyncpa [#allocation3], 0  ;;  %s615_s0 = inlined_call_operand.hbm [shape: bf16[8,128], index: 0, kind: input, shape index: {}]   ;;  %s616_s1 = inlined_call_operand.hbm [shape: bf16[128,128], index: 1, kind: input, shape index: {}]   ;;  %s617_s2 = inlined_call_operand.vmem [shape: f32[1,128], index: 2, kind: input, shape index: {}]   ;;  %s618_s3 = inlined_call_operand.hbm [shape: bf16[128,128], index: 3, kind: input, shape index: {}]   ;;  %s619_s4 = inlined_call_operand.vmem [shape: f32[1,128], index: 4, kind: input, shape index: {}]   ;;  %s620_s5 = inlined_call_operand.hbm [shape: bf16[8,128], index: 5, kind: output, shape index: {}]  }
   0x1   :  { %11 = vsyncpa [#allocation6], 0 }
   0x2   :  { %12 = vsyncpa [#allocation4], 0  ;;  %s517_s18 = smov [#allocation5]   ;;  %s423_s22 = scalar_lea.hbm %s616_s1, 1024 }
   0x3   :  { %s28_s19 = sshll.u32 %s517_s18, 4  ;;  %p424_p0 = scmp.ne.s32.totalorder %s616_s1, %s423_s22  ;;  %s29_s19 = int_to_ptr.vmem [resolvable:$true] %s28_s19 }
   0x4   :  { %p427_p1 = scmp.lt.u32.totalorder %s423_s22, %s616_s1 }
   0x6   :  { %p429_p2 = pnand %p427_p1, %p424_p0 }
   0x8   :  { %432 = shalt.err (!%p429_p2)
}
   0x9   :  { %s433_s27 = scalar_lea.vmem %s29_s19, 1024  ;;  %p438_p4 = scmp.lt.s32.totalorder %s29_s19, %s29_s19 }
   0xa   :  { %p434_p3 = scmp.ne.s32.totalorder %s29_s19, %s433_s27  ;;  %p439_p5 = scmp.lt.s32.totalorder %s433_s27, %s433_s27 }
   0xc   :  { %p440_p6 = por %p439_p5, %p438_p4 }
   0xe   :  { %p441_p7 = pnand %p440_p6, %p434_p3 }
  0x10   :  { %444 = shalt.err (!%p441_p7)
}
  0x11   :  { %s518_s28 = smov 64   ;;  %s519_s29 = smov 4  }
  0x12   :  { %34 = dma.hbm_to_vmem [thread:$0]  %s616_s1, 1024, %s29_s19, [#allocation6], %s518_s28, %s518_s28, %s519_s29  }
  0x13   :  { %s520_s7 = smov [#allocation2]   ;;  %s521_s9 = smov [#allocation7]  }
  0x14   :  { %s19_s8 = sshll.u32 %s520_s7, 4  ;;  %s42_s10 = sshll.u32 %s521_s9, 4  ;;  %s20_s8 = int_to_ptr.vmem [resolvable:$true] %s19_s8  ;;  %s43_s10 = int_to_ptr.vmem [resolvable:$true] %s42_s10 }
  0x15   :  { %s445_s13 = scalar_lea.hbm %s615_s0, 64 }
  0x16   :  { %p446_p8 = scmp.ne.s32.totalorder %s615_s0, %s445_s13  ;;  %p449_p9 = scmp.lt.u32.totalorder %s445_s13, %s615_s0 }
  0x18   :  { %p451_p10 = pnand %p449_p9, %p446_p8 }
  0x1a   :  { %454 = shalt.err (!%p451_p10)
}
  0x1b   :  { %s455_s1 = scalar_lea.vmem %s20_s8, 64  ;;  %p460_p12 = scmp.lt.s32.totalorder %s20_s8, %s20_s8 }
  0x1c   :  { %p456_p11 = scmp.ne.s32.totalorder %s20_s8, %s455_s1  ;;  %p461_p13 = scmp.lt.s32.totalorder %s455_s1, %s455_s1 }
  0x1e   :  { %p462_p0 = por %p461_p13, %p460_p12 }
  0x20   :  { %p463_p1 = pnand %p462_p0, %p456_p11 }
  0x22   :  { %466 = shalt.err (!%p463_p1)
}
  0x23   :  { %22 = dma.hbm_to_vmem [thread:$0]  %s615_s0, 64, %s20_s8, [#allocation3]  }
  0x24   :  { %s467_s22 = scalar_lea.hbm %s618_s3, 1024 }
  0x25   :  { %p468_p2 = scmp.ne.s32.totalorder %s618_s3, %s467_s22  ;;  %p471_p3 = scmp.lt.u32.totalorder %s467_s22, %s618_s3 }
  0x27   :  { %p473_p4 = pnand %p471_p3, %p468_p2 }
  0x29   :  { %476 = shalt.err (!%p473_p4)
}
  0x2a   :  { %s477_s27 = scalar_lea.vmem %s43_s10, 1024  ;;  %p482_p6 = scmp.lt.s32.totalorder %s43_s10, %s43_s10 }
  0x2b   :  { %p478_p5 = scmp.ne.s32.totalorder %s43_s10, %s477_s27  ;;  %p483_p7 = scmp.lt.s32.totalorder %s477_s27, %s477_s27 }
  0x2d   :  { %p484_p8 = por %p483_p7, %p482_p6 }
  0x2f   :  { %p485_p9 = pnand %p484_p8, %p478_p5 }
  0x31   :  { %488 = shalt.err (!%p485_p9)
}
  0x32   :  { %48 = dma.hbm_to_vmem [thread:$0]  %s618_s3, 1024, %s43_s10, [#allocation6], %s518_s28, %s518_s28, %s519_s29  }
  0x33   :  { %511 = dma.done.wait [#allocation3], 64  }
  0x34   :  { %512 = vsyncadd [#allocation3], 4294967232 }
  0x35   :  { %513 = dma.done.wait [#allocation6], 2048  }
  0x36   :  { %514 = vsyncadd [#allocation6], 4294965248  ;;  %v522_v0 = vmov 0.0   ;;  %vm523_vm0 = vmmov 0   ;;  %v403_v1 = vld [vmem:[#allocation5] sm:$0xff]   ;;  %v404_v2 = vld [vmem:[#allocation5 + $0x8] sm:$0xff]   ;;  %v286_v26 = vlaneseq }
  0x37   :  { %355 = vmatprep.subr.bf16.mxu0 %v522_v0  ;;  %371 = vmatprep.mubr.msk.bf16.mxu0 %vm523_vm0, %v522_v0  ;;  %v405_v3 = vld [vmem:[#allocation5 + $0x10] sm:$0xff]   ;;  %v411_v4 = vld [vmem:[#allocation7] sm:$0xff]   ;;  %v406_v5 = vld [vmem:[#allocation5 + $0x18] sm:$0xff]  }
  0x38   :  { %375 = vmatprep.subr.bf16.mxu1 %v522_v0  ;;  %391 = vmatprep.mubr.msk.bf16.mxu1 %vm523_vm0, %v522_v0  ;;  %v412_v6 = vld [vmem:[#allocation7 + $0x8] sm:$0xff]   ;;  %v407_v7 = vld [vmem:[#allocation5 + $0x20] sm:$0xff]   ;;  %v413_v8 = vld [vmem:[#allocation7 + $0x10] sm:$0xff]   ;;  %v287_v27 = vand.u32 127, %v286_v26 }
  0x39   :  { %356 = vmatpush3.bf16.msra.mxu0 %v403_v1  ;;  %376 = vmatpush3.bf16.msra.mxu1 %v411_v4  ;;  %v408_v9 = vld [vmem:[#allocation5 + $0x28] sm:$0xff]   ;;  %v414_v10 = vld [vmem:[#allocation7 + $0x18] sm:$0xff]   ;;  %v409_v11 = vld [vmem:[#allocation5 + $0x30] sm:$0xff]  }
  0x3a   :  { %357 = vmatprep.subr.bf16.mxu0 %v522_v0  ;;  %377 = vmatprep.subr.bf16.mxu1 %v522_v0  ;;  %v415_v12 = vld [vmem:[#allocation7 + $0x20] sm:$0xff]   ;;  %v410_v13 = vld [vmem:[#allocation5 + $0x38] sm:$0xff]   ;;  %v416_v14 = vld [vmem:[#allocation7 + $0x28] sm:$0xff]   ;;  %vm288_vm1 = vcmp.lt.s32.totalorder %v287_v27, 32 }
  0x3b   :  { %v61_v15 = vld [vmem:[#allocation2] sm:$0xf]  ;;  %v417_v16 = vld [vmem:[#allocation7 + $0x30] sm:$0xff]  }
  0x3c   :  { %v418_v17 = vld [vmem:[#allocation7 + $0x38] sm:$0xff]  }
  0x3d   :  { %358 = vmatpush3.bf16.msra.mxu0 %v404_v2  ;;  %378 = vmatpush3.bf16.msra.mxu1 %v412_v6  ;;  %v319_v18 = vld [vmem:[%s617_s2] ss:$0 sm:$0xff]  ;;  %s524_s2 = smov [#allocation8]  }
  0x3e   :  { %359 = vmatprep.subr.bf16.mxu0 %v522_v0  ;;  %379 = vmatprep.subr.bf16.mxu1 %v522_v0  ;;  %v328_v28 = vld [vmem:[%s619_s4] ss:$0 sm:$0xff]  ;;  %s309_s7 = sshll.u32 %s524_s2, 4  ;;  %s310_s7 = int_to_ptr.vmem [resolvable:$true] %s309_s7 }
  0x3f   :  { %s489_s4 = scalar_lea.vmem %s310_s7, 64  ;;  %p494_p11 = scmp.lt.s32.totalorder %s310_s7, %s310_s7 }
  0x40   :  { %p490_p10 = scmp.ne.s32.totalorder %s310_s7, %s489_s4  ;;  %p495_p12 = scmp.lt.s32.totalorder %s489_s4, %s489_s4 }
  0x41   :  { %360 = vmatpush3.bf16.msra.mxu0 %v405_v3  ;;  %380 = vmatpush3.bf16.msra.mxu1 %v413_v8 }
  0x42   :  { %361 = vmatprep.subr.bf16.mxu0 %v522_v0  ;;  %381 = vmatprep.subr.bf16.mxu1 %v522_v0  ;;  %p496_p13 = por %p495_p12, %p494_p11 }
  0x44   :  { %p497_p0 = pnand %p496_p13, %p490_p10 }
  0x45   :  { %362 = vmatpush3.bf16.msra.mxu0 %v406_v5  ;;  %382 = vmatpush3.bf16.msra.mxu1 %v414_v10 }
  0x46   :  { %363 = vmatprep.subr.bf16.mxu0 %v522_v0  ;;  %383 = vmatprep.subr.bf16.mxu1 %v522_v0 }
  0x49   :  { %364 = vmatpush3.bf16.msra.mxu0 %v407_v7  ;;  %384 = vmatpush3.bf16.msra.mxu1 %v415_v12 }
  0x4a   :  { %365 = vmatprep.subr.bf16.mxu0 %v522_v0  ;;  %385 = vmatprep.subr.bf16.mxu1 %v522_v0 }
  0x4d   :  { %366 = vmatpush3.bf16.msra.mxu0 %v408_v9  ;;  %386 = vmatpush3.bf16.msra.mxu1 %v416_v14 }
  0x4e   :  { %367 = vmatprep.subr.bf16.mxu0 %v522_v0  ;;  %387 = vmatprep.subr.bf16.mxu1 %v522_v0 }
  0x51   :  { %368 = vmatpush3.bf16.msra.mxu0 %v409_v11  ;;  %388 = vmatpush3.bf16.msra.mxu1 %v417_v16 }
  0x52   :  { %369 = vmatprep.subr.bf16.mxu0 %v522_v0  ;;  %389 = vmatprep.subr.bf16.mxu1 %v522_v0 }
  0x55   :  { %370 = vmatpush3.bf16.msra.mxu0 %v410_v13  ;;  %390 = vmatpush3.bf16.msra.mxu1 %v418_v17 }
  0x58   :  { %372 = vmatmul.mubr.bf16.vlgmr.msra.gmra.mrb[0].mxu0 %v61_v15 }
 0x12b   :  { %v167_v19 = vpop.f32.mrb[0].mxu0 }
 0x12c   :  { %v168_v20 = vadd.f32 %v319_v18, %v167_v19  ;;  %v373_v21 = vpop.f32.mrb[1].mxu0 }
 0x12d   :  { %v170_v22 = vpop.f32.mrb[2].mxu0 }
 0x12e   :  { %v173_v23 = vmax.f32 %v168_v20, 0.0  ;;  %v374_v24 = vpop.f32.mrb[3].mxu0 }
 0x130   :  { %v174_v25 = vpack.c.bf16 %v173_v23, %v173_v23 }
 0x132   :  { %392 = vmatmul.mubr.bf16.vlgmr.msra.gmra.mrb[0].mxu1 %v174_v25 }
 0x205   :  { %v280_v29 = vpop.f32.mrb[0].mxu1 }
 0x206   :  { %v281_v30 = vadd.f32 %v328_v28, %v280_v29  ;;  %v393_v31 = vpop.f32.mrb[1].mxu1 }
 0x207   :  { %v283_v32 = vpop.f32.mrb[2].mxu1 }
 0x208   :  { %v394_v33 = vpop.f32.mrb[3].mxu1  ;;  %v291_v34 = vsel %vm288_vm1, %v281_v30, -inf }
 0x209   :  { %292 = vmax.xlane.f32.xlu0 %v291_v34 }
 0x296   :  { %v293_v35 = vpop.xlane.xlu0 %292 }
 0x297   :  { %v294_v36 = vsub.f32 %v291_v34, %v293_v35 }
 0x299   :  { %v295_v37 = vmul.f32 1.442695, %v294_v36 }
 0x29b   :  { %419 = vpow2.f32 %v295_v37 }
 0x2a5   :  { %v420_v38 = vpop.eup %419 }
 0x2a6   :  { %297 = vadd.xlane.f32.xlu0 %v420_v38 }
 0x333   :  { %v298_v39 = vpop.xlane.xlu0 %297 }
 0x334   :  { %421 = vrcp.f32 %v298_v39 }
 0x33e   :  { %v422_v40 = vpop.eup %421 }
 0x33f   :  { %v300_v41 = vmul.f32 %v422_v40, %v420_v38 }
 0x341   :  { %v301_v42 = vpack.c.bf16 %v300_v41, %v300_v41 }
 0x343   :  { %302 = vst [vmem:[#allocation8] sm:$0xf] %v301_v42 }
 0x344   :  { %500 = shalt.err (!%p497_p0)
}
 0x345   :  { %s501_s10 = scalar_lea.hbm %s620_s5, 64 }
 0x346   :  { %p502_p1 = scmp.ne.s32.totalorder %s620_s5, %s501_s10  ;;  %p505_p2 = scmp.lt.u32.totalorder %s501_s10, %s620_s5 }
 0x348   :  { %p507_p3 = pnand %p505_p2, %p502_p1 }
 0x34a   :  { %510 = shalt.err (!%p507_p3)
}
 0x34b   :  { %312 = dma.vmem_to_hbm [thread:$0]  %s310_s7, 64, %s620_s5, [#allocation4]  }
 0x34c   :  { %515 = dma.done.wait [#allocation4], 64  }
 0x34d   :  { %516 = vsyncadd [#allocation4], 4294967232 }
 0x34e   :  { %316 = vsyncpa [#allocation3], 1 }
 0x34f   :  { %317 = vsyncpa [#allocation6], 1 }
 0x350   :  { %318 = vsyncpa [#allocation4], 1 }

</bundles_post_ra>
